<compile_context>
chip_gen: v5e
topology: v5e:2x2
jax: 0.10.0
libtpu: 0.0.40
codegen_flags: <defaults>
</compile_context>

<pallas_src>
import functools

import jax
import jax.numpy as jnp
from jax.experimental import pallas as pl
from jax.experimental.pallas import tpu as pltpu


def _kl_row_kernel(s_ref, t_ref, o_ref, *, inv_t, batch, block_rows):
    """Per-row KL(teacher || student) for one (block_rows, N) tile.

    Writes a (block_rows, 1) column of per-row KL sums.  No carried state, so
    the single grid axis is fully parallel (megacore-shardable).
    """
    inv_t = jnp.float32(inv_t)
    s = s_ref[...].astype(jnp.float32) * inv_t
    t = t_ref[...].astype(jnp.float32) * inv_t

    # Student log-softmax pieces.
    s_max = jnp.max(s, axis=-1, keepdims=True)
    s_shift = s - s_max
    s_lse = jnp.log(jnp.sum(jnp.exp(s_shift), axis=-1, keepdims=True))

    # Teacher pieces with the softmax normalization folded into the reduction:
    #   KL_row = (1/t_sum) * sum_j t_exp_j * (t_shift_j - s_shift_j)
    #            + (s_lse - log t_sum)
    t_max = jnp.max(t, axis=-1, keepdims=True)
    t_shift = t - t_max
    t_exp = jnp.exp(t_shift)
    t_sum = jnp.sum(t_exp, axis=-1, keepdims=True)
    inner = jnp.sum(t_exp * (t_shift - s_shift), axis=-1, keepdims=True)

    # Exact division on a (rows, 1) vector only (approx recip would cost ~1e-4
    # relative error on the loss for essentially zero perf gain here).
    kl = inner / t_sum + (s_lse - jnp.log(t_sum))

    if batch % block_rows != 0:
        # Ragged last block: rows past `batch` hold undefined data.  Their
        # output writes are dropped by Pallas anyway, but mask them so the
        # stored values are deterministic (select discards any NaN).
        row0 = pl.program_id(0) * block_rows
        rows = row0 + jax.lax.broadcasted_iota(jnp.int32, kl.shape, 0)
        kl = jnp.where(rows < batch, kl, jnp.float32(0.0))

    o_ref[...] = kl


def _vmem_budgets():
    """(working-set budget, vmem_limit_bytes) per TPU generation."""
    try:
        cap = int(pltpu.get_tpu_info().vmem_capacity_bytes)
    except Exception:  # no local TPU info available -> assume smallest VMEM
        cap = 64 * 1024 * 1024
    if cap <= 96 * 1024 * 1024:
        # 64 MiB-class parts (v7x): leave headroom for Mosaic internal scratch.
        return 36 * 1024 * 1024, 48 * 1024 * 1024
    # 128 MiB parts (v5e / v6e): take much larger tiles.
    return 72 * 1024 * 1024, 96 * 1024 * 1024


def _choose_block_rows(batch, num_classes, itemsize, work_budget):
    """Largest row tile whose full working set fits the VMEM budget.

    Working set per row = double-buffered input tiles (2 arrays x 2 buffers x
    itemsize) + ~4 live f32 intermediates the kernel materializes
    (s_shift, t_shift, t_exp, t_exp*(t_shift-s_shift)).
    """
    mult = 16                               # bf16-safe sublane multiple
    per_row = num_classes * (2 * 2 * itemsize + 4 * 4)
    max_rows = max(mult, (work_budget // per_row) // mult * mult)
    b_up = pl.cdiv(batch, mult) * mult      # never exceed the rounded batch
    block_rows = int(min(max_rows, b_up))
    # Guarantee >= 2 grid blocks when the batch allows it so v7x's two
    # TensorCores can each take a shard of the "parallel" grid axis.
    if batch >= 2 * mult:
        half = pl.cdiv(pl.cdiv(batch, 2), mult) * mult
        block_rows = int(min(block_rows, half))
    return block_rows


def kl_divergency(student_dis, teacher_dis, temperature=2.0, block_rows=None):
    """Pallas TPU implementation of KL_divergency.forward (batchmean).

    bf16 inputs are the preferred dtype when callers can tolerate bf16 logits
    in HBM (kernel upcasts to f32 internally); the kernel is HBM-read bound.
    """
    assert student_dis.shape == teacher_dis.shape
    assert student_dis.dtype == teacher_dis.dtype
    B, N = student_dis.shape
    itemsize = jnp.dtype(student_dis.dtype).itemsize

    work_budget, vmem_limit = _vmem_budgets()
    if block_rows is None:
        block_rows = _choose_block_rows(B, N, itemsize, work_budget)
    assert block_rows % 8 == 0
    if itemsize < 4:
        assert block_rows % 16 == 0, "sub-32-bit inputs need 16-row multiples"

    num_blocks = pl.cdiv(B, block_rows)

    kernel = functools.partial(
        _kl_row_kernel,
        inv_t=1.0 / float(temperature),
        batch=B,
        block_rows=block_rows,
    )

    row_kl = pl.pallas_call(
        kernel,
        out_shape=jax.ShapeDtypeStruct((B, 1), jnp.float32),
        grid_spec=pltpu.PrefetchScalarGridSpec(
            num_scalar_prefetch=0,
            grid=(num_blocks,),
            in_specs=[
                pl.BlockSpec((block_rows, N), lambda i: (i, 0)),
                pl.BlockSpec((block_rows, N), lambda i: (i, 0)),
            ],
            out_specs=pl.BlockSpec((block_rows, 1), lambda i: (i, 0)),
        ),
        compiler_params=pltpu.CompilerParams(
            dimension_semantics=("parallel",),
            vmem_limit_bytes=vmem_limit,
        ),
    )(student_dis, teacher_dis)

    scale = jnp.float32(temperature * temperature) / jnp.float32(B)
    return jnp.sum(row_kl) * scale


def kl_divergency_ref(student_dis, teacher_dis, temperature=2.0):
    """Pure-JAX reference mirroring the PyTorch module."""
    T = temperature
    s = student_dis.astype(jnp.float32) / T
    t = teacher_dis.astype(jnp.float32) / T
    student_p = jax.nn.softmax(s, axis=-1)
    teacher_p = jax.nn.softmax(t, axis=-1)
    kl = teacher_p * (jnp.log(teacher_p) - jnp.log(student_p))
    B = student_dis.shape[0]
    return jnp.sum(kl) / B * T * T


if __name__ == "__main__":
    key = jax.random.PRNGKey(0)
    temperature = 2.0  # stands in for args.temprature_ts

    # Small shapes consistent with the module: (batch, num_classes).
    #  - (10, 256)  exercises the ragged last block (no padding path).
    #  - (64, 384)  exercises >= 2 grid blocks (parallel axis / megacore).
    #  - bf16 case  exercises sub-32-bit inputs with in-kernel upcast.
    cases = [
        ((8, 128), jnp.float32),
        ((10, 256), jnp.float32),
        ((64, 384), jnp.float32),
        ((48, 256), jnp.bfloat16),
    ]
    for (B, N), dtype in cases:
        key, k1, k2 = jax.random.split(key, 3)
        student_dis = jax.random.normal(k1, (B, N), dtype=jnp.float32).astype(dtype)
        teacher_dis = jax.random.normal(k2, (B, N), dtype=jnp.float32).astype(dtype)

        loss = kl_divergency(student_dis, teacher_dis, temperature=temperature)
        loss = jax.block_until_ready(loss)

        ref = kl_divergency_ref(student_dis, teacher_dis, temperature=temperature)
        tol = 1e-4 if dtype == jnp.float32 else 1e-3
        assert jnp.allclose(loss, ref, rtol=tol, atol=1e-6), (B, N, dtype, loss, ref)

    print("KERNEL_OK")
</pallas_src>

<mosaic_0001>
module attributes {stable_mosaic.version = 11 : i64} {
  func.func @_kl_row_kernel(%arg0: i32, %arg1: memref<16x128xf32, #tpu.memory_space<vmem>>, %arg2: memref<16x128xf32, #tpu.memory_space<vmem>>, %arg3: memref<16x1xf32, #tpu.memory_space<vmem>>) attributes {dimension_semantics = [#tpu.dimension_semantics<parallel>], iteration_bounds = array<i64: 1>, scalar_prefetch = 0 : i64, scratch_operands = 0 : i64, tpu.core_type = #tpu.core_type<tc>, window_params = [{transform_indices = @transform_0, window_bounds = array<i64: 16, 128>}, {transform_indices = @transform_1, window_bounds = array<i64: 16, 128>}, {transform_indices = @transform_2, window_bounds = array<i64: 16, 1>}]} {
    %c0 = arith.constant 0 : index
    %c0_0 = arith.constant 0 : index
    %0 = vector.load %arg1[%c0, %c0_0] : memref<16x128xf32, #tpu.memory_space<vmem>>, vector<16x128xf32>
    %cst = arith.constant 5.000000e-01 : f32
    %1 = vector.broadcast %cst : f32 to vector<16x128xf32>
    %2 = arith.mulf %0, %1 : vector<16x128xf32>
    %c0_1 = arith.constant 0 : index
    %c0_2 = arith.constant 0 : index
    %3 = vector.load %arg2[%c0_1, %c0_2] : memref<16x128xf32, #tpu.memory_space<vmem>>, vector<16x128xf32>
    %cst_3 = arith.constant 5.000000e-01 : f32
    %4 = vector.broadcast %cst_3 : f32 to vector<16x128xf32>
    %5 = arith.mulf %3, %4 : vector<16x128xf32>
    %cst_4 = arith.constant dense<0xFF800000> : vector<16xf32>
    %6 = vector.multi_reduction <maximumf>, %2, %cst_4 [1] : vector<16x128xf32> to vector<16xf32>
    %7 = vector.shape_cast %6 : vector<16xf32> to vector<16x1xf32>
    %8 = vector.broadcast %7 : vector<16x1xf32> to vector<16x128xf32>
    %9 = arith.subf %2, %8 : vector<16x128xf32>
    %10 = math.exp %9 : vector<16x128xf32>
    %cst_5 = arith.constant dense<0.000000e+00> : vector<16xf32>
    %11 = vector.multi_reduction <add>, %10, %cst_5 [1] : vector<16x128xf32> to vector<16xf32>
    %12 = vector.shape_cast %11 : vector<16xf32> to vector<16x1xf32>
    %13 = math.log %12 : vector<16x1xf32>
    %cst_6 = arith.constant dense<0xFF800000> : vector<16xf32>
    %14 = vector.multi_reduction <maximumf>, %5, %cst_6 [1] : vector<16x128xf32> to vector<16xf32>
    %15 = vector.shape_cast %14 : vector<16xf32> to vector<16x1xf32>
    %16 = vector.broadcast %15 : vector<16x1xf32> to vector<16x128xf32>
    %17 = arith.subf %5, %16 : vector<16x128xf32>
    %18 = math.exp %17 : vector<16x128xf32>
    %cst_7 = arith.constant dense<0.000000e+00> : vector<16xf32>
    %19 = vector.multi_reduction <add>, %18, %cst_7 [1] : vector<16x128xf32> to vector<16xf32>
    %20 = vector.shape_cast %19 : vector<16xf32> to vector<16x1xf32>
    %21 = arith.subf %17, %9 : vector<16x128xf32>
    %22 = arith.mulf %18, %21 : vector<16x128xf32>
    %cst_8 = arith.constant dense<0.000000e+00> : vector<16xf32>
    %23 = vector.multi_reduction <add>, %22, %cst_8 [1] : vector<16x128xf32> to vector<16xf32>
    %24 = vector.shape_cast %23 : vector<16xf32> to vector<16x1xf32>
    %25 = arith.divf %24, %20 : vector<16x1xf32>
    %26 = math.log %20 : vector<16x1xf32>
    %27 = arith.subf %13, %26 : vector<16x1xf32>
    %28 = arith.addf %25, %27 : vector<16x1xf32>
    %c16_i32 = arith.constant 16 : i32
    %29 = arith.muli %arg0, %c16_i32 : i32
    %30 = tpu.iota {dimensions = array<i32: 0>} : vector<16x1xi32>
    %31 = vector.broadcast %29 : i32 to vector<16x1xi32>
    %32 = arith.addi %31, %30 : vector<16x1xi32>
    %c8_i32 = arith.constant 8 : i32
    %33 = vector.broadcast %c8_i32 : i32 to vector<16x1xi32>
    %34 = arith.cmpi slt, %32, %33 : vector<16x1xi32>
    %cst_9 = arith.constant 0.000000e+00 : f32
    %35 = vector.broadcast %cst_9 : f32 to vector<16x1xf32>
    %36 = arith.select %34, %28, %35 : vector<16x1xi1>, vector<16x1xf32>
    %c0_10 = arith.constant 0 : index
    %c0_11 = arith.constant 0 : index
    %37 = vector.load %arg3[%c0_10, %c0_11] : memref<16x1xf32, #tpu.memory_space<vmem>>, vector<16x1xf32>
    tpu.vector_store %arg3[%c0_10, %c0_11], %36 {strides = array<i32>} : memref<16x1xf32, #tpu.memory_space<vmem>>, vector<16x1xf32>,
    return
  }
  func.func @transform_0(%arg0: i32) -> (i32, i32) {
    %c0_i32 = arith.constant 0 : i32
    %c0_i32_0 = arith.constant 0 : i32
    return %arg0, %c0_i32 : i32, i32
  }
  func.func @transform_1(%arg0: i32) -> (i32, i32) {
    %c0_i32 = arith.constant 0 : i32
    %c0_i32_0 = arith.constant 0 : i32
    return %arg0, %c0_i32 : i32, i32
  }
  func.func @transform_2(%arg0: i32) -> (i32, i32) {
    %c0_i32 = arith.constant 0 : i32
    %c0_i32_0 = arith.constant 0 : i32
    return %arg0, %c0_i32 : i32, i32
  }
}

</mosaic_0001>

<bundles_post_ra>
// kernel: tpu_custom_call.1
= control target key start
LH: loop header
LB: loop body
LE: loop exit
PB: predicated region body
PF: predicated region fallthrough
CT: control target
= control target key end

     0   :  { %7 = vsyncpa [#allocation3], 0  ;;  %s282_s0 = inlined_call_operand.hbm [shape: f32[8,128], index: 0, kind: input, shape index: {}]   ;;  %s283_s1 = inlined_call_operand.hbm [shape: f32[8,128], index: 1, kind: input, shape index: {}]   ;;  %s284_s2 = inlined_call_operand.vmem [shape: f32[8,1], index: 2, kind: output, shape index: {}]  }
   0x1   :  { %8 = vsyncpa [#allocation5], 0 }
   0x2   :  { %12 = vsyncadd [#allocation3], 128  ;;  %s13_s11 = sshll.u32 %s282_s0, 4  ;;  %s253_s12 = smov [#allocation2]   ;;  %s14_s11 = int_to_ptr.hbm [resolvable:$true] %s13_s11 }
   0x3   :  { %s15_s13 = sshll.u32 %s253_s12, 4  ;;  %s254_s14 = smov 128   ;;  %s16_s13 = int_to_ptr.vmem [resolvable:$true] %s15_s13 }
   0x4   :  { %s255_s15 = smov 8  }
   0x5   :  { %21 = dma.hbm_to_vmem [thread:$0]  %s14_s11, 128, %s16_s13, [#allocation3], %s254_s14, %s254_s14, %s255_s15  }
   0x6   :  { %25 = vsyncadd [#allocation5], 128  ;;  %s26_s18 = sshll.u32 %s283_s1, 4  ;;  %s256_s19 = smov [#allocation4]   ;;  %s27_s18 = int_to_ptr.hbm [resolvable:$true] %s26_s18 }
   0x7   :  { %s28_s20 = sshll.u32 %s256_s19, 4  ;;  %s29_s20 = int_to_ptr.vmem [resolvable:$true] %s28_s20 }
   0x8   :  { %34 = dma.hbm_to_vmem [thread:$0]  %s27_s18, 128, %s29_s20, [#allocation5], %s254_s14, %s254_s14, %s255_s15  }
   0x9   :  { %249 = dma.done.wait [#allocation3], 256  }
   0xa   :  { %250 = vsyncadd [#allocation3], 4294967040 }
   0xb   :  { %251 = dma.done.wait [#allocation5], 256  }
   0xc   :  { %252 = vsyncadd [#allocation5], 4294967040  ;;  %vm140_vm0 = vcmask 7168   ;;  %v47_v0 = vld [vmem:[#allocation4] sm:$0xff]  ;;  %v43_v2 = vld [vmem:[#allocation2] sm:$0xff] }
   0xd   :  { %v49_v1 = vmul.f32 0.5, %v47_v0  ;;  %v45_v3 = vmul.f32 0.5, %v43_v2 }
   0xf   :  { %69 = vmax.xlane.f32.xlu0 %v49_v1 }
  0x17   :  { %51 = vmax.xlane.f32.xlu0 %v45_v3 }
  0x82   :  { %v70_v4 = vpop.xlane.xlu0 %69 }
  0x83   :  { %v73_v5 = vsub.f32 %v49_v1, %v70_v4 }
  0x85   :  { %v75_v6 = vmul.f32 1.442695, %v73_v5 }
  0x87   :  { %191 = vpow2.f32 %v75_v6 }
  0x8a   :  { %v52_v7 = vpop.xlane.xlu0 %51 }
  0x8b   :  { %v55_v8 = vsub.f32 %v45_v3, %v52_v7 }
  0x8d   :  { %v192_v9 = vpop.eup %191  ;;  %v57_v10 = vmul.f32 1.442695, %v55_v8  ;;  %v83_v11 = vsub.f32 %v73_v5, %v55_v8 }
  0x8e   :  { %79 = vadd.xlane.f32.xlu1 %v192_v9 }
  0x8f   :  { %193 = vpow2.f32 %v57_v10  ;;  %v85_v12 = vmul.f32 %v192_v9, %v83_v11 }
  0x91   :  { %87 = vadd.xlane.f32.xlu2 %v85_v12 }
  0x95   :  { %v194_v13 = vpop.eup %193 }
  0x96   :  { %61 = vadd.xlane.f32.xlu1 %v194_v13 }
 0x101   :  { %v80_v14 = vpop.xlane.xlu1 %79 }
 0x102   :  { %195 = vrcp.f32 %v80_v14  ;;  %v102_v19 = vand.u32 2147483648, %v80_v14  ;;  %v100_v21 = vand.u32 2147483647, %v80_v14  ;;  %vm96_vm2 = vweird.f32 %v80_v14 }
 0x103   :  { %197 = vlog2.f32 %v80_v14 }
 0x104   :  { %v103_v25 = vor.u32 1.1754944e-38, %v102_v19  ;;  %vm101_vm4 = vcmp.eq.f32.partialorder %v100_v21, 8.507059e+37  ;;  %v88_v30 = vpop.xlane.xlu2 %87 }
 0x108   :  { %v196_v15 = vpop.eup %195 }
 0x109   :  { %v92_v16 = vmul.f32 %v196_v15, %v80_v14  ;;  %v62_v17 = vpop.xlane.xlu1 %61  ;;  %vm97_vm1 = vweird.f32 %v196_v15  ;;  %v198_v22 = vpop.eup %197 }
 0x10a   :  { %199 = vlog2.f32 %v62_v17  ;;  %vm98_vm3 = vmor %vm96_vm2, %vm97_vm1  ;;  %v122_v27 = vmul.f32 0.6931472, %v198_v22 }
 0x10b   :  { %v93_v18 = vsub.f32 1.0, %v92_v16 }
 0x10d   :  { %v94_v20 = vmul.f32 %v196_v15, %v93_v18 }
 0x10f   :  { %v95_v23 = vadd.f32 %v196_v15, %v94_v20 }
 0x110   :  { %v200_v24 = vpop.eup %199 }
 0x111   :  { %v99_v26 = vsel %vm98_vm3, %v196_v15, %v95_v23  ;;  %v66_v28 = vmul.f32 0.6931472, %v200_v24 }
 0x112   :  { %v104_v29 = vsel %vm101_vm4, %v103_v25, %v99_v26 }
 0x113   :  { %v105_v31 = vmul.f32 %v104_v29, %v88_v30  ;;  %v125_v32 = vsub.f32 %v66_v28, %v122_v27 }
 0x115   :  { %v127_v33 = vadd.f32 %v125_v32, %v105_v31 }
 0x117   :  { %141 = vst.msk [vmem:[#allocation6] sm:$0xff] %vm140_vm0, %v127_v33 }
 0x11e   :  { %v173_v34 = vld [vmem:[#allocation6] sm:$0xff] }
 0x11f   :  { %174 = vst [vmem:[%s284_s2] sm:$0xff] %v173_v34 }
 0x120   :  { %180 = vsyncpa [#allocation3], 1 }
 0x121   :  { %181 = vsyncpa [#allocation5], 1 }

</bundles_post_ra>
